<compile_context>
chip_gen: v7x
topology: tpu7x:2x2x1
jax: 0.10.0
libtpu: 0.0.40
codegen_flags: <defaults>
</compile_context>

<pallas_src>
import jax
import jax.numpy as jnp
from jax.experimental import pallas as pl
from jax.experimental.pallas import tpu as pltpu


def _evaluator_kernel(x_ref, w1_ref, b1_ref, w2_ref, b2_ref, out_ref):
    """Fused 3-evaluator MLP + weighted combine for one row tile.

    x_ref  : VMEM [TM, H]   float32  (cast to bf16 in-kernel)
    w1_ref : VMEM [H, 3L]   bfloat16 (three first-layer weights, lane-concat)
    b1_ref : VMEM [1, 3L]   float32
    w2_ref : VMEM [3L, 4]   bfloat16 (block-diag cols 0..2, weighted col 3)
    b2_ref : VMEM [1, 4]    float32
    out_ref: VMEM [TM, 4]   float32  (risk, benefit, coherence, combined)
    """
    # In-kernel bf16 cast of the activations (MXU-bound kernel: cast is hidden).
    x = x_ref[...].astype(jnp.bfloat16)
    # Layer 1 (fused over the 3 evaluators): bf16 MXU matmul, f32 accumulate.
    h = jnp.dot(x, w1_ref[...], preferred_element_type=jnp.float32)
    h = jnp.maximum(h + b1_ref[...], 0.0)
    # Layer 2 + softmax-weighted combine folded into one bf16 matmul.
    s = jnp.dot(h.astype(jnp.bfloat16), w2_ref[...],
                preferred_element_type=jnp.float32)
    out_ref[...] = (s + b2_ref[...]).astype(out_ref.dtype)


def _round_up(a, b):
    return (a + b - 1) // b * b


@jax.jit
def scenario_evaluator_forward(scenarios, context_states, params):
    """JAX/Pallas equivalent of ScenarioEvaluator.forward.

    Returns (selected_scenarios [B, k, H], metrics dict).
    `context_states` (and metadata_list) are unused by the reference forward.
    """
    del context_states  # unused by the reference implementation
    B, S, H = scenarios.shape
    L = params["w1"].shape[-1]
    N = B * S

    # ---- parameter prep (tiny, stays in XLA glue) -------------------------
    sw = jax.nn.softmax(params["importance_weights"].astype(jnp.float32), axis=0)

    # First layer fused across the 3 evaluators: [H, 3L] bf16, bias [1, 3L] f32.
    w1 = params["w1"].astype(jnp.float32)                      # [3, H, L]
    w1_cat = jnp.transpose(w1, (1, 0, 2)).reshape(H, 3 * L)    # [H, 3L]
    w1_cat_bf = w1_cat.astype(jnp.bfloat16)
    b1_cat = params["b1"].astype(jnp.float32).reshape(1, 3 * L)

    # Second layer as a [3L, 4] matrix: block-diag w2 (cols 0..2) + weighted
    # block-diag combination (col 3). Bias row: [b2_0, b2_1, b2_2, sw.b2].
    w2 = params["w2"].astype(jnp.float32).reshape(3, L)        # [3, L]
    b2 = params["b2"].astype(jnp.float32)                      # [3]
    blockdiag = (jnp.eye(3, dtype=jnp.float32)[:, None, :]
                 * w2[:, :, None]).reshape(3 * L, 3)           # [3L, 3]
    w2_ext = jnp.concatenate(
        [blockdiag, (blockdiag @ sw)[:, None]], axis=-1)       # [3L, 4]
    w2_ext_bf = w2_ext.astype(jnp.bfloat16)
    b_ext = jnp.concatenate([b2, jnp.dot(sw, b2)[None]])[None, :]  # [1, 4]

    # x stays f32 in HBM; no wrapper-side cast or pad (extra HBM passes).
    x = scenarios.reshape(N, H)

    # ---- tiling over N ----------------------------------------------------
    # TM: multiple of 8 (f32 sublanes), capped at 2048 to amortize the
    # ~0.35us/step overhead, and sized so the grid has >=2 steps whenever
    # possible (both v7x TensorCores get work).
    TM = min(2048, _round_up(pl.cdiv(N, 2), 8))
    grid = (pl.cdiv(N, TM),)   # boundary tile masked; rows >= N are dropped

    # Raise the scoped-VMEM limit explicitly (v5e default is only 16 MiB) but
    # stay well under v7x's 64 MiB physical VMEM.
    vmem_bytes = (2 * TM * H * 4            # x tile, double-buffered, f32
                  + 2 * H * 3 * L * 2       # W1_cat bf16 (double-buffered)
                  + 2 * 3 * L * 4           # b1_cat
                  + 2 * 3 * L * 4 * 2       # W2_ext bf16 (+ tiny bias)
                  + TM * 3 * L * (4 + 2)    # h f32 + bf16 copy (intermediates)
                  + 2 * TM * 4 * 4)         # out tile, double-buffered
    vmem_limit = int(min(max(2 * vmem_bytes, 32 * 1024 * 1024),
                         48 * 1024 * 1024))

    flops = 2 * N * (H * 3 * L) + 2 * N * (3 * L * 4)
    bytes_accessed = (x.size * 4 + w1_cat_bf.size * 2 + w2_ext_bf.size * 2
                      + (b1_cat.size + b_ext.size) * 4 + N * 4 * 4)
    cost = pl.CostEstimate(flops=flops, transcendentals=0,
                           bytes_accessed=bytes_accessed)

    out = pl.pallas_call(
        _evaluator_kernel,
        out_shape=jax.ShapeDtypeStruct((N, 4), jnp.float32),
        grid=grid,
        in_specs=[
            pl.BlockSpec((TM, H), lambda i: (i, 0)),          # x tile (f32)
            pl.BlockSpec((H, 3 * L), lambda i: (0, 0)),       # W1_cat (resident)
            pl.BlockSpec((1, 3 * L), lambda i: (0, 0)),       # b1_cat (resident)
            pl.BlockSpec((3 * L, 4), lambda i: (0, 0)),       # W2_ext (resident)
            pl.BlockSpec((1, 4), lambda i: (0, 0)),           # b_ext  (resident)
        ],
        out_specs=pl.BlockSpec((TM, 4), lambda i: (i, 0)),
        compiler_params=pltpu.CompilerParams(
            dimension_semantics=("parallel",),
            vmem_limit_bytes=vmem_limit),
        cost_estimate=cost,
    )(x, w1_cat_bf, b1_cat, w2_ext_bf, b_ext)

    risk_scores = out[:, 0].reshape(B, S)
    benefit_scores = out[:, 1].reshape(B, S)
    coherence_scores = out[:, 2].reshape(B, S)
    combined_scores = out[:, 3].reshape(B, S)

    # top-k selection and gather (matches torch.topk largest+sorted semantics)
    k = min(3, S)
    sel_scores, indices = jax.lax.top_k(combined_scores, k)          # [B, k]
    idx_exp = indices[:, :, None]                                     # [B, k, 1]
    selected_scenarios = jnp.take_along_axis(scenarios, idx_exp, axis=1)  # [B, k, H]

    metrics = {
        "risk_scores": risk_scores,
        "benefit_scores": benefit_scores,
        "coherence_scores": coherence_scores,
        "combined_scores": combined_scores,
        "selected_scores": sel_scores,
    }
    return selected_scenarios, metrics


def init_params(key, hidden_size, latent_dim):
    """Deterministic synthetic parameters matching the module's shapes.

    Three evaluators, each: Linear(H->L), ReLU, Linear(L->1),
    plus importance_weights = ones(3) (as in the PyTorch __init__).
    """
    keys = jax.random.split(key, 12)
    scale1 = 1.0 / jnp.sqrt(hidden_size)
    scale2 = 1.0 / jnp.sqrt(latent_dim)
    w1 = jnp.stack([
        jax.random.normal(keys[i], (hidden_size, latent_dim), jnp.float32) * scale1
        for i in range(3)
    ])                                                # [3, H, L]
    b1 = jnp.stack([
        jax.random.normal(keys[3 + i], (1, latent_dim), jnp.float32) * scale1
        for i in range(3)
    ])                                                # [3, 1, L]
    w2 = jnp.stack([
        jax.random.normal(keys[6 + i], (1, latent_dim), jnp.float32) * scale2
        for i in range(3)
    ])                                                # [3, 1, L]
    b2 = jnp.stack([
        jax.random.normal(keys[9 + i], (), jnp.float32) * scale2
        for i in range(3)
    ])                                                # [3]
    return {
        "w1": w1,
        "b1": b1,
        "w2": w2,
        "b2": b2,
        "importance_weights": jnp.ones((3,), jnp.float32),
    }


if __name__ == "__main__":
    # Small shapes consistent with the module: batch=2, seq=8, hidden=32, latent=16.
    # NOTE: at these toy sizes the MXU lanes are underfilled (H=32, 3L=48); for
    # production shapes (H=768, L=256 -> 3L=768) the kernel's dims are lane-aligned.
    B, S, H, L = 2, 8, 32, 16

    key = jax.random.PRNGKey(0)
    k_param, k_scen, k_ctx = jax.random.split(key, 3)

    params = init_params(k_param, H, L)
    scenarios = jax.random.normal(k_scen, (B, S, H), jnp.float32)
    context_states = jax.random.normal(k_ctx, (B, S, H), jnp.float32)

    selected, metrics = scenario_evaluator_forward(scenarios, context_states, params)
    selected = jax.block_until_ready(selected)
    metrics = jax.tree_util.tree_map(jax.block_until_ready, metrics)

    # Basic shape sanity checks mirroring the reference semantics.
    k = min(3, S)
    assert selected.shape == (B, k, H)
    assert metrics["combined_scores"].shape == (B, S)
    assert metrics["selected_scores"].shape == (B, k)

    # Numerical check against a pure-JAX f32 reference of the torch forward.
    x_ref = scenarios.reshape(B * S, H)
    ref_scores = []
    for ev in range(3):
        h = jnp.maximum(x_ref @ params["w1"][ev] + params["b1"][ev], 0.0)
        ref_scores.append(jnp.sum(h * params["w2"][ev], -1) + params["b2"][ev])
    sw = jax.nn.softmax(params["importance_weights"])
    ref_combined = (sw[0] * ref_scores[0] + sw[1] * ref_scores[1]
                    + sw[2] * ref_scores[2]).reshape(B, S)
    # bf16 matmul operands, f32 accumulation -> loose tolerance (can perturb
    # near-tie top-k orderings vs an exact f32 reference).
    assert jnp.allclose(metrics["combined_scores"], ref_combined,
                        atol=5e-2, rtol=5e-2)

    print("KERNEL_OK")
</pallas_src>

<mosaic_0001>
module attributes {stable_mosaic.version = 11 : i64} {
  func.func @_evaluator_kernel(%arg0: i32, %arg1: memref<8x32xf32, #tpu.memory_space<vmem>>, %arg2: memref<32x48xbf16, #tpu.memory_space<vmem>>, %arg3: memref<1x48xf32, #tpu.memory_space<vmem>>, %arg4: memref<48x4xbf16, #tpu.memory_space<vmem>>, %arg5: memref<1x4xf32, #tpu.memory_space<vmem>>, %arg6: memref<8x4xf32, #tpu.memory_space<vmem>>) attributes {dimension_semantics = [#tpu.dimension_semantics<parallel>], iteration_bounds = array<i64: 2>, scalar_prefetch = 0 : i64, scratch_operands = 0 : i64, tpu.core_type = #tpu.core_type<tc>, window_params = [{transform_indices = @transform_0, window_bounds = array<i64: 8, 32>}, {pipeline_mode = #tpu.pipeline_mode<synchronous>, transform_indices = @transform_1, window_bounds = array<i64: 32, 48>}, {pipeline_mode = #tpu.pipeline_mode<synchronous>, transform_indices = @transform_2, window_bounds = array<i64: 1, 48>}, {pipeline_mode = #tpu.pipeline_mode<synchronous>, transform_indices = @transform_3, window_bounds = array<i64: 48, 4>}, {pipeline_mode = #tpu.pipeline_mode<synchronous>, transform_indices = @transform_4, window_bounds = array<i64: 1, 4>}, {transform_indices = @transform_5, window_bounds = array<i64: 8, 4>}]} {
    %c0 = arith.constant 0 : index
    %c0_0 = arith.constant 0 : index
    %0 = vector.load %arg1[%c0, %c0_0] : memref<8x32xf32, #tpu.memory_space<vmem>>, vector<8x32xf32>
    %1 = arith.truncf %0 : vector<8x32xf32> to vector<8x32xbf16>
    %c0_1 = arith.constant 0 : index
    %c0_2 = arith.constant 0 : index
    %2 = vector.load %arg2[%c0_1, %c0_2] : memref<32x48xbf16, #tpu.memory_space<vmem>>, vector<32x48xbf16>
    %cst = arith.constant dense<0.000000e+00> : vector<8x48xf32>
    %3 = tpu.matmul %1, %2, %cst {dimension_numbers = #tpu.dot_dimension_numbers<[1], [0], [0], [1], [0, 0, 1, 1], [], []>} : vector<8x32xbf16>, vector<32x48xbf16>, vector<8x48xf32> -> vector<8x48xf32>
    %c0_3 = arith.constant 0 : index
    %c0_4 = arith.constant 0 : index
    %4 = vector.load %arg3[%c0_3, %c0_4] : memref<1x48xf32, #tpu.memory_space<vmem>>, vector<1x48xf32>
    %5 = vector.broadcast %4 : vector<1x48xf32> to vector<8x48xf32>
    %6 = arith.addf %3, %5 : vector<8x48xf32>
    %cst_5 = arith.constant 0.000000e+00 : f32
    %7 = vector.broadcast %cst_5 : f32 to vector<8x48xf32>
    %8 = arith.maximumf %6, %7 : vector<8x48xf32>
    %9 = arith.truncf %8 : vector<8x48xf32> to vector<8x48xbf16>
    %c0_6 = arith.constant 0 : index
    %c0_7 = arith.constant 0 : index
    %10 = vector.load %arg4[%c0_6, %c0_7] : memref<48x4xbf16, #tpu.memory_space<vmem>>, vector<48x4xbf16>
    %cst_8 = arith.constant dense<0.000000e+00> : vector<8x4xf32>
    %11 = tpu.matmul %9, %10, %cst_8 {dimension_numbers = #tpu.dot_dimension_numbers<[1], [0], [0], [1], [0, 0, 1, 1], [], []>} : vector<8x48xbf16>, vector<48x4xbf16>, vector<8x4xf32> -> vector<8x4xf32>
    %c0_9 = arith.constant 0 : index
    %c0_10 = arith.constant 0 : index
    %12 = vector.load %arg5[%c0_9, %c0_10] : memref<1x4xf32, #tpu.memory_space<vmem>>, vector<1x4xf32>
    %13 = vector.broadcast %12 : vector<1x4xf32> to vector<8x4xf32>
    %14 = arith.addf %11, %13 : vector<8x4xf32>
    %c0_11 = arith.constant 0 : index
    %c0_12 = arith.constant 0 : index
    %15 = vector.load %arg6[%c0_11, %c0_12] : memref<8x4xf32, #tpu.memory_space<vmem>>, vector<8x4xf32>
    tpu.vector_store %arg6[%c0_11, %c0_12], %14 {strides = array<i32>} : memref<8x4xf32, #tpu.memory_space<vmem>>, vector<8x4xf32>,
    return
  }
  func.func @transform_0(%arg0: i32) -> (i32, i32) {
    %c0_i32 = arith.constant 0 : i32
    %c0_i32_0 = arith.constant 0 : i32
    return %arg0, %c0_i32 : i32, i32
  }
  func.func @transform_1(%arg0: i32) -> (i32, i32) {
    %c0_i32 = arith.constant 0 : i32
    %c0_i32_0 = arith.constant 0 : i32
    %c0_i32_1 = arith.constant 0 : i32
    return %c0_i32, %c0_i32_0 : i32, i32
  }
  func.func @transform_2(%arg0: i32) -> (i32, i32) {
    %c0_i32 = arith.constant 0 : i32
    %c0_i32_0 = arith.constant 0 : i32
    %c0_i32_1 = arith.constant 0 : i32
    return %c0_i32, %c0_i32_0 : i32, i32
  }
  func.func @transform_3(%arg0: i32) -> (i32, i32) {
    %c0_i32 = arith.constant 0 : i32
    %c0_i32_0 = arith.constant 0 : i32
    %c0_i32_1 = arith.constant 0 : i32
    return %c0_i32, %c0_i32_0 : i32, i32
  }
  func.func @transform_4(%arg0: i32) -> (i32, i32) {
    %c0_i32 = arith.constant 0 : i32
    %c0_i32_0 = arith.constant 0 : i32
    %c0_i32_1 = arith.constant 0 : i32
    return %c0_i32, %c0_i32_0 : i32, i32
  }
  func.func @transform_5(%arg0: i32) -> (i32, i32) {
    %c0_i32 = arith.constant 0 : i32
    %c0_i32_0 = arith.constant 0 : i32
    return %arg0, %c0_i32 : i32, i32
  }
}

</mosaic_0001>

<bundles_post_ra>
// kernel: squeeze.7
= control target key start
LH: loop header
LB: loop body
LE: loop exit
PB: predicated region body
PF: predicated region fallthrough
CT: control target
= control target key end

     0   :  { %vm7_vm0 = vcmask 64512   ;;  %s39_s0 = inlined_call_operand.vmem [shape: f32[16], index: 0, kind: input, shape index: {}]   ;;  %s40_s1 = inlined_call_operand.vmem [shape: f32[2,8], index: 1, kind: output, shape index: {}]  }
   0x1   :  { %v4_v0 = vld [vmem:[%s39_s0] sm:$0x1]  ;;  %s22_s0 = smov 120  }
   0x2   :  { %5 = vst [vmem:[#allocation1] sm:$0x1] %v4_v0 }
   0x9   :  { %v9_v1 = vld [vmem:[#allocation1] sm:$0x1]  }
   0xa   :  { %v6_v2 = vld [vmem:[#allocation1] sm:$0x1]   ;;  %10 = vrot.lane.b32.xlu0 %v9_v1, %s22_s0 }
   0xb   :  { %8 = vst.msk [vmem:[#allocation0] sm:$0x1] %vm7_vm0, %v6_v2  }
  0x7c   :  { %v11_v3 = vpop.permute.xlu0 %10  }
  0x7d   :  { %14 = vst.msk [vmem:[#allocation0 + $0x1] sm:$0x1] %vm7_vm0, %v11_v3  }
  0x84   :  { %v18_v4 = vld [vmem:[#allocation0] sm:$0x3] }
  0x85   :  { %20 = vst [vmem:[%s40_s1] sm:$0x3] %v18_v4 }

// kernel: squeeze.5
= control target key start
LH: loop header
LB: loop body
LE: loop exit
PB: predicated region body
PF: predicated region fallthrough
CT: control target
= control target key end

     0   :  { %s85_s0 = inlined_call_operand.vmem [shape: f32[16], index: 0, kind: input, shape index: {}]   ;;  %s86_s1 = inlined_call_operand.hbm [shape: f32[2,8], index: 1, kind: output, shape index: {}]  }
   0x1   :  { %v5_v0 = vld [vmem:[%s85_s0] sm:$0x1] }
   0x2   :  { %2 = vsyncpa [#allocation1], 0  ;;  %6 = vst [vmem:[#allocation3] sm:$0x1] %v5_v0  ;;  %vm8_vm0 = vcmask 64512   ;;  %s58_s0 = smov 120  }
   0x3   :  { %s59_s8 = smov [#allocation0]  }
   0x4   :  { %s26_s9 = sshll.u32 %s59_s8, 4  ;;  %s27_s9 = int_to_ptr.vmem [resolvable:$true] %s26_s9 }
   0x5   :  { %s34_s10 = scalar_lea.vmem %s27_s9, 32  ;;  %p39_p1 = scmp.lt.s32.totalorder %s27_s9, %s27_s9 }
   0x6   :  { %p35_p0 = scmp.ne.s32.totalorder %s27_s9, %s34_s10  ;;  %p40_p2 = scmp.lt.s32.totalorder %s34_s10, %s34_s10 }
   0x8   :  { %p41_p3 = por %p40_p2, %p39_p1 }
   0x9   :  { %v10_v1 = vld [vmem:[#allocation3] sm:$0x1]  }
   0xa   :  { %v7_v2 = vld [vmem:[#allocation3] sm:$0x1]   ;;  %11 = vrot.lane.b32.xlu0 %v10_v1, %s58_s0  ;;  %p42_p4 = pnand %p41_p3, %p35_p0 }
   0xb   :  { %9 = vst.msk [vmem:[#allocation2] sm:$0x1] %vm8_vm0, %v7_v2  }
  0x7c   :  { %v12_v3 = vpop.permute.xlu0 %11  }
  0x7d   :  { %15 = vst.msk [vmem:[#allocation2 + $0x1] sm:$0x1] %vm8_vm0, %v12_v3  }
  0x84   :  { %v19_v4 = vld [vmem:[#allocation2] sm:$0x3] }
  0x85   :  { %21 = vst [vmem:[#allocation0] sm:$0x3] %v19_v4 }
  0x86   :  { %45 = shalt.err (!%p42_p4)
}
  0x87   :  { %s46_s13 = scalar_lea.hbm %s86_s1, 32 }
  0x88   :  { %p47_p5 = scmp.ne.s32.totalorder %s86_s1, %s46_s13  ;;  %p50_p6 = scmp.lt.u32.totalorder %s46_s13, %s86_s1 }
  0x8a   :  { %p52_p7 = pnand %p50_p6, %p47_p5 }
  0x8c   :  { %55 = shalt.err (!%p52_p7)
}
  0x8d   :  { %29 = dma.vmem_to_hbm [thread:$0]  %s27_s9, 32, %s86_s1, [#allocation1]  }
  0x8e   :  { %56 = dma.done.wait [#allocation1], 32  }
  0x8f   :  { %57 = vsyncadd [#allocation1], 4294967264 }
  0x90   :  { %31 = vsyncpa [#allocation1], 1 }

// kernel: scenario_evaluator_forward.1
= control target key start
LH: loop header
LB: loop body
LE: loop exit
PB: predicated region body
PF: predicated region fallthrough
CT: control target
= control target key end

     0   :  { %s520_s18 = smov 0   ;;  %s558_s0 = inlined_call_operand.vmem [shape: f32[16,32], index: 0, kind: input, shape index: {}]   ;;  %s559_s1 = inlined_call_operand.vmem [shape: bf16[32,48], index: 1, kind: input, shape index: {}]   ;;  %s560_s2 = inlined_call_operand.vmem [shape: f32[1,48], index: 2, kind: input, shape index: {}]   ;;  %s561_s3 = inlined_call_operand.vmem [shape: bf16[48,4], index: 3, kind: input, shape index: {}]   ;;  %s562_s4 = inlined_call_operand.vmem [shape: f32[1,4], index: 4, kind: input, shape index: {}]   ;;  %s563_s5 = inlined_call_operand.vmem [shape: f32[16,4], index: 5, kind: output, shape index: {}]  }
   0x1 LB: > { %s422_s19 = sadd.s32 4294967295, %s486_s18   ;;  %p426_p0 = scmp.ge.s32.totalorder %s486_s18, 1  ;;  %s486_s18 = sphi %s520_s18, %s15_s18  }
   0x2   : > { %p186_p1 = scmp.lt.s32.totalorder %s486_s18, 3 }
   0x4   : > { %p187_p2 = pnand %p426_p0, %p186_p1 }
   0x5   : > { %v475_v0 = vld [vmem:[%s559_s1] sm:$0xff] (!%p187_p2)   ;;  %v488_v1 = vmov (!%p187_p2), 0.0   ;;  %v476_v2 = vld [vmem:[%s559_s1 + $0x8] sm:$0xff] (!%p187_p2)   ;;  %vm489_vm0 = vmmov (!%p187_p2), 0   ;;  %p212_p3 = scmp.lt.s32.totalorder (!%p187_p2), %s422_s19, 1  ;;  %vm246_vm1 = vcmask (!%p187_p2), 261120  }
   0x6   : > { %190 = sbr.rel (%p187_p2) target bundleno = 452 (0x1c4), region = 40  ;;  %447 = vmatprep.subr.bf16.mxu0 (!%p187_p2), %v488_v1  ;;  %455 = vmatprep.subr.bf16.mxu1 (!%p187_p2), %v488_v1  ;;  %v477_v3 = vld [vmem:[%s561_s3] sm:$0xff] (!%p187_p2)   ;;  %v478_v6 = vld [vmem:[%s561_s3 + $0x8] sm:$0xff] (!%p187_p2)   ;;  %v479_v7 = vld [vmem:[%s561_s3 + $0x10] sm:$0xff] (!%p187_p2)   ;;  %vm323_vm2 = vcmask (!%p187_p2), 392192   ;;  %vm367_vm3 = vcmask (!%p187_p2), 31744  }
   0x7   : > { %448 = vmatpush3.bf16.msra.mxu0 (!%p187_p2), %v475_v0  ;;  %451 = vmatprep.mubr.msk.bf16.mxu0 (!%p187_p2), %vm489_vm0, %v488_v1  ;;  %v429_v8 = vld [vmem:[%s560_s2] ss:$0 sm:$0xff] (!%p187_p2) }
   0x8   : > { %449 = vmatprep.subr.bf16.mxu0 (!%p187_p2), %v488_v1  ;;  %461 = vmatprep.mubr.msk.bf16.mxu1 (!%p187_p2), %vm489_vm0, %v488_v1  ;;  %v433_v16 = vld [vmem:[%s562_s4] ss:$0 sm:$0xff] (!%p187_p2) }
   0x9   : > { %456 = vmatpush3.bf16.msra.mxu1 (!%p187_p2), %v477_v3 }
   0xa   : > { %457 = vmatprep.subr.bf16.mxu1 (!%p187_p2), %v488_v1 }
   0xb   : > { %450 = vmatpush3.bf16.msra.mxu0 (!%p187_p2), %v476_v2 }
   0xd   : > { %s565_s19 = smov (!%p212_p3, %s422_s19), 1  ;;  %458 = vmatpush3.bf16.msra.mxu1 %v478_v6 }
   0xe   : > { %s427_s26 = sshll.u32 %s565_s19, 3  ;;  %459 = vmatprep.subr.bf16.mxu1 %v488_v1 }
   0xf   : > { %s215_s29 = scalar_lea.vmem %s558_s0, %s427_s26  ;;  %s219_s15 = scalar_lea.vmem %s563_s5, %s427_s26 }
  0x10   : > { %v221_v4 = vld [vmem:[%s215_s29] sm:$0xff] }
  0x11   : > { %v222_v5 = vpack.c.bf16 %v221_v4, %v221_v4  ;;  %460 = vmatpush3.bf16.msra.mxu1 %v479_v7 }
  0x13   : > { %452 = vmatmul.mubr.msk.bf16.vlgmr.msra.gmra.mrb[0].mxu0 %vm246_vm1, %v222_v5 }
  0xe6   : > { %v284_v9 = vpop.f32.mrb[0].mxu0 }
  0xe7   : > { %v285_v10 = vadd.f32 %v429_v8, %v284_v9  ;;  %v453_v11 = vpop.f32.mrb[1].mxu0 }
  0xe8   : > { %v287_v12 = vpop.f32.mrb[2].mxu0 }
  0xe9   : > { %v290_v13 = vmax.f32 %v285_v10, 0.0  ;;  %v454_v14 = vpop.f32.mrb[3].mxu0 }
  0xeb   : > { %v291_v15 = vpack.c.bf16 %v290_v13, %v290_v13 }
  0xed   : > { %462 = vmatmul.mubr.msk.bf16.vlgmr.msra.gmra.mrb[0].mxu1 %vm323_vm2, %v291_v15 }
 0x1c0   : > { %v361_v17 = vpop.f32.mrb[0].mxu1 }
 0x1c1   : > { %v362_v18 = vadd.f32 %v433_v16, %v361_v17  ;;  %v463_v19 = vpop.f32.mrb[1].mxu1 }
 0x1c2   : > { %v364_v20 = vpop.f32.mrb[2].mxu1 }
 0x1c3   : > { %368 = vst.msk [vmem:[%s219_s15] sm:$0xff] %vm367_vm3, %v362_v18  ;;  %v464_v21 = vpop.f32.mrb[3].mxu1 }
 0x1c4 PF: > { %s15_s18 = sadd.s32 1, %s486_s18  }
 0x1c5   : > { %p12_p4 = scmp.ge.s32.totalorder %s15_s18, 4  }
 0x1c7   :  { %14 = sbr.rel (!%p12_p4) target bundleno = 1 (0x1), region = 70 }

</bundles_post_ra>
